<compile_context>
chip_gen: v7x
topology: tpu7x:2x2x1
jax: 0.10.0
libtpu: 0.0.40
codegen_flags: <defaults>
</compile_context>

<pallas_src>
import functools

import jax
import jax.numpy as jnp
import numpy as np
from jax import lax
from jax.experimental import pallas as pl
from jax.experimental.pallas import tpu as pltpu


def tt_bond_dims(N, r, f, constrict_bond=True):
    """Replicates MainNodeLayer's bond-dim construction (perturb=False path)."""

    def build_left(b0, R):
        return (b0, min(R, b0 * f) if constrict_bond else R)

    def build_right(R, b1):
        return (min(R, b1 * f) if constrict_bond else R, b1)

    b0 = build_left(1, r)
    bn = build_right(r, 1)
    left_stack = [b0]
    right_stack = [bn]
    middle = [b0, bn]
    for i in range(N - 2):
        left_r = left_stack[-1][1]
        right_r = right_stack[0][0]
        if i == N - 3:
            middle = [*left_stack, (left_r, right_r), *right_stack]
        if i % 2 == 0:
            left_stack.append(build_left(left_r, r))
        else:
            right_stack.insert(0, build_right(r, right_r))
    return middle  # list of (left_bond, right_bond) per carriage


def _tt_kernel(xa_ref, w_ref, out_ref, *, n_cores, tb, out_dim, bonds,
               col_offsets):
    """Contract the tensor train for one batch tile (batch on the lane axis).

    xa_ref : (tb, f)          bf16 input tile (bias feature already appended)
    w_ref  : (f, total_cols)  bf16 concatenation of all flattened TT cores
    out_ref: (out_dim, tb)    lane-dense output slab (batch on lanes)
    """
    xa = xa_ref[...]                                   # (tb, f) bf16
    w = w_ref[...]                                     # (f, total) bf16

    # One wide MXU matmul for every carriage at once, with the batch landing
    # on the lane axis: contract W's f (axis 0) with xa's f (axis 1).
    # Result: (total_cols, tb), f32 accumulate.  No data transpose needed.
    y = lax.dot_general(w, xa,
                        dimension_numbers=(((0,), (1,)), ((), ())),
                        preferred_element_type=jnp.float32)

    # Last carriage first (right bond == 1): carry holds its left bond.
    o_last = col_offsets[n_cores - 1]
    l_last = bonds[n_cores - 1][0]
    carry = y[o_last:o_last + l_last, :]               # (l_N, tb)

    # Middle carriages, contracted right-to-left over the bond dims.  Batch is
    # on the full 128-lane axis; the reduce over the bond is a cheap sublane
    # (XLU) reduction that rides under the MXU/DMA.
    for i in range(n_cores - 2, 0, -1):
        li, ri = bonds[i]
        oi = col_offsets[i]
        vi = y[oi:oi + li * ri, :].reshape(li, ri, tb)
        carry = jnp.sum(vi * carry[None, :, :], axis=1)       # (l_i, tb)

    # First carriage carries the output (channel) dimension.
    r1 = bonds[0][1]
    v0 = y[0:out_dim * r1, :].reshape(out_dim, r1, tb)
    out = jnp.sum(v0 * carry[None, :, :], axis=1)             # (C, tb) f32

    out_ref[...] = out.astype(out_ref.dtype)


def _pick_tb(B, tb_max=2048):
    """Pick a batch tile: as large as possible (<= tb_max) but keep the
    'parallel' grid >= 2 steps when the batch allows it (v7x has 2 TCs)."""
    b256 = ((B + 255) // 256) * 256
    tb = min(tb_max, b256)
    if b256 > 256:
        half = ((b256 // 2 + 255) // 256) * 256
        tb = min(tb, max(256, half))
    return tb


def tensor_train_nn_forward(x, cores, *, out_dim, bonds, tb=None,
                            compute_dtype=jnp.bfloat16, out_dtype=None):
    """Bias augmentation + core flattening/fusion (glue); TT contraction in Pallas."""
    B, d = x.shape
    f = d + 1
    n_cores = len(cores)
    out_dtype = x.dtype if out_dtype is None else out_dtype

    if tb is None:
        tb = _pick_tb(B)

    # x = cat(x, ones) along features (TensorTrainNN.forward bias feature).
    xa = jnp.concatenate([x, jnp.ones_like(x[..., :1])], axis=-1)  # (B, f)

    # Ragged-batch support: pad rows to a multiple of tb.  Padded rows are
    # all-zero (including the bias column), so their outputs are zeros and are
    # sliced off below.
    b_pad = ((B + tb - 1) // tb) * tb
    if b_pad != B:
        xa = jnp.pad(xa, ((0, b_pad - B), (0, 0)))
    xa = xa.astype(compute_dtype)

    # Flatten cores (l, up, f, r) -> (f, *) matrices and fuse into one weight
    # matrix so the kernel does a single matmul.  Assert that the declared
    # bond dims match the actual core shapes (static slices depend on them).
    core_mats = []
    col_offsets = []
    off = 0
    for i, A in enumerate(cores):
        l, u, ff, r2 = A.shape
        assert ff == f, f"core {i}: feature dim {ff} != {f}"
        assert (l, r2) == tuple(bonds[i]), (
            f"core {i}: bonds {bonds[i]} != actual shape ({l}, {r2})")
        if i == 0:
            assert u == out_dim, f"core 0: output dim {u} != {out_dim}"
            # (1, C, f, r) -> (f, C, r) -> (f, C*r)
            M = jnp.transpose(A[0], (1, 0, 2)).reshape(f, u * r2)
        else:
            assert u == 1, f"core {i}: expected singleton up dim, got {u}"
            # (l, 1, f, r) -> (f, l, r) -> (f, l*r)
            M = jnp.transpose(A[:, 0], (1, 0, 2)).reshape(f, l * r2)
        col_offsets.append(off)
        off += M.shape[1]
        core_mats.append(M)
    W = jnp.concatenate(core_mats, axis=1).astype(compute_dtype)  # (f, total)
    total_cols = off

    kernel = functools.partial(
        _tt_kernel, n_cores=n_cores, tb=tb, out_dim=out_dim,
        bonds=tuple(tuple(b) for b in bonds), col_offsets=tuple(col_offsets))

    grid = (b_pad // tb,)
    in_specs = [
        pl.BlockSpec((tb, f), lambda i: (i, 0)),                 # xa tile
        pl.BlockSpec((f, total_cols), lambda i: (0, 0)),         # fused weights
    ]
    # Output is (out_dim, b_pad) with the batch on the lane axis: lane-dense
    # unmasked stores, no channel padding.
    out_spec = pl.BlockSpec((out_dim, tb), lambda i: (0, i))

    out_cb = pl.pallas_call(
        kernel,
        out_shape=jax.ShapeDtypeStruct((out_dim, b_pad), out_dtype),
        grid_spec=pltpu.PrefetchScalarGridSpec(
            num_scalar_prefetch=0,
            grid=grid,
            in_specs=in_specs,
            out_specs=out_spec,
        ),
        compiler_params=pltpu.CompilerParams(
            dimension_semantics=("parallel",)),
    )(xa, W)

    # Trivial (C, B) -> (B, C) transpose + slice in the wrapper.
    return jnp.transpose(out_cb[:, :B])


def reference_forward(x, cores, compute_dtype=jnp.float32):
    """Pure-JAX reference for the TT contraction (inputs rounded to compute_dtype)."""
    xa = jnp.concatenate([x, jnp.ones_like(x[..., :1])], axis=-1)  # (B, f)
    xa = xa.astype(compute_dtype).astype(jnp.float32)
    cs = [c.astype(compute_dtype).astype(jnp.float32) for c in cores]
    # First carriage: (1, C, f, r) -> (B, C, r)
    carry = jnp.einsum('bf,cfr->bcr', xa, cs[0][0])
    for A in cs[1:]:
        vi = jnp.einsum('bf,lfr->blr', xa, A[:, 0])  # (B, l, r)
        carry = jnp.einsum('bcl,blr->bcr', carry, vi)
    return carry[:, :, 0]  # final right bond == 1


if __name__ == "__main__":
    # Config consistent with TensorTrainNN(input_features=31, output_shape=(4,),
    # N=3, r=8): f = 32, bond dims [(1,8),(8,8),(8,1)].  B chosen ragged (500)
    # to exercise the padding path; the tile picker gives tb=256 -> a 2-step
    # parallel grid (both v7x TensorCores busy).
    B, d, C, N, r = 500, 31, 4, 3, 8
    f = d + 1
    bonds = tt_bond_dims(N, r, f, constrict_bond=True)

    key = jax.random.PRNGKey(0)
    keys = jax.random.split(key, N + 1)
    x = jax.random.normal(keys[0], (B, d), dtype=jnp.float32)

    # Deterministic synthetic core init (TensorNode init is library-internal).
    cores = []
    for i in range(N):
        l, rr = bonds[i]
        up = C if i == 0 else 1
        scale = 1.0 / np.sqrt(float(l * f))
        A = scale * jax.random.normal(keys[i + 1], (l, up, f, rr), dtype=jnp.float32)
        cores.append(A)

    out = tensor_train_nn_forward(x, cores, out_dim=C, bonds=bonds)
    out = jax.block_until_ready(out)

    # Compare against an f32 reference run on bf16-rounded inputs (kernel uses
    # bf16 MXU operands with f32 accumulate).
    ref = reference_forward(x, cores, compute_dtype=jnp.bfloat16)
    assert out.shape == (B, C)
    np.testing.assert_allclose(np.asarray(out), np.asarray(ref),
                               rtol=1e-2, atol=1e-2)

    print("KERNEL_OK")
</pallas_src>

<mosaic_0001>
module attributes {stable_mosaic.version = 11 : i64} {
  func.func @_tt_kernel(%arg0: i32, %arg1: memref<256x32xbf16, #tpu.memory_space<vmem>>, %arg2: memref<32x104xbf16, #tpu.memory_space<vmem>>, %arg3: memref<4x256xf32, #tpu.memory_space<vmem>>) attributes {dimension_semantics = [#tpu.dimension_semantics<parallel>], iteration_bounds = array<i64: 2>, scalar_prefetch = 0 : i64, scratch_operands = 0 : i64, tpu.core_type = #tpu.core_type<tc>, window_params = [{transform_indices = @transform_0, window_bounds = array<i64: 256, 32>}, {pipeline_mode = #tpu.pipeline_mode<synchronous>, transform_indices = @transform_1, window_bounds = array<i64: 32, 104>}, {transform_indices = @transform_2, window_bounds = array<i64: 4, 256>}]} {
    %c0 = arith.constant 0 : index
    %c0_0 = arith.constant 0 : index
    %0 = vector.load %arg1[%c0, %c0_0] : memref<256x32xbf16, #tpu.memory_space<vmem>>, vector<256x32xbf16>
    %c0_1 = arith.constant 0 : index
    %c0_2 = arith.constant 0 : index
    %1 = vector.load %arg2[%c0_1, %c0_2] : memref<32x104xbf16, #tpu.memory_space<vmem>>, vector<32x104xbf16>
    %cst = arith.constant dense<0.000000e+00> : vector<104x256xf32>
    %2 = tpu.matmul %1, %0, %cst {dimension_numbers = #tpu.dot_dimension_numbers<[0], [1], [1], [0], [0, 1, 1, 0], [], []>} : vector<32x104xbf16>, vector<256x32xbf16>, vector<104x256xf32> -> vector<104x256xf32>
    %3 = vector.extract_strided_slice %2 {offsets = [96, 0], sizes = [8, 256], strides = [1, 1]} : vector<104x256xf32> to vector<8x256xf32>
    %4 = vector.extract_strided_slice %2 {offsets = [32, 0], sizes = [64, 256], strides = [1, 1]} : vector<104x256xf32> to vector<64x256xf32>
    %5 = vector.shape_cast %4 : vector<64x256xf32> to vector<8x8x256xf32>
    %6 = vector.shape_cast %3 : vector<8x256xf32> to vector<1x8x256xf32>
    %7 = vector.broadcast %6 : vector<1x8x256xf32> to vector<8x8x256xf32>
    %8 = arith.mulf %5, %7 : vector<8x8x256xf32>
    %cst_3 = arith.constant dense<0.000000e+00> : vector<8x256xf32>
    %9 = vector.multi_reduction <add>, %8, %cst_3 [1] : vector<8x8x256xf32> to vector<8x256xf32>
    %10 = vector.extract_strided_slice %2 {offsets = [0, 0], sizes = [32, 256], strides = [1, 1]} : vector<104x256xf32> to vector<32x256xf32>
    %11 = vector.shape_cast %10 : vector<32x256xf32> to vector<4x8x256xf32>
    %12 = vector.shape_cast %9 : vector<8x256xf32> to vector<1x8x256xf32>
    %13 = vector.broadcast %12 : vector<1x8x256xf32> to vector<4x8x256xf32>
    %14 = arith.mulf %11, %13 : vector<4x8x256xf32>
    %cst_4 = arith.constant dense<0.000000e+00> : vector<4x256xf32>
    %15 = vector.multi_reduction <add>, %14, %cst_4 [1] : vector<4x8x256xf32> to vector<4x256xf32>
    %c0_5 = arith.constant 0 : index
    %c0_6 = arith.constant 0 : index
    %16 = vector.load %arg3[%c0_5, %c0_6] : memref<4x256xf32, #tpu.memory_space<vmem>>, vector<4x256xf32>
    tpu.vector_store %arg3[%c0_5, %c0_6], %15 {strides = array<i32>} : memref<4x256xf32, #tpu.memory_space<vmem>>, vector<4x256xf32>,
    return
  }
  func.func @transform_0(%arg0: i32) -> (i32, i32) {
    %c0_i32 = arith.constant 0 : i32
    %c0_i32_0 = arith.constant 0 : i32
    return %arg0, %c0_i32 : i32, i32
  }
  func.func @transform_1(%arg0: i32) -> (i32, i32) {
    %c0_i32 = arith.constant 0 : i32
    %c0_i32_0 = arith.constant 0 : i32
    %c0_i32_1 = arith.constant 0 : i32
    return %c0_i32, %c0_i32_0 : i32, i32
  }
  func.func @transform_2(%arg0: i32) -> (i32, i32) {
    %c0_i32 = arith.constant 0 : i32
    %c0_i32_0 = arith.constant 0 : i32
    return %c0_i32, %arg0 : i32, i32
  }
}

</mosaic_0001>

<bundles_post_ra>
// kernel: tpu_custom_call.1
= control target key start
LH: loop header
LB: loop body
LE: loop exit
PB: predicated region body
PF: predicated region fallthrough
CT: control target
= control target key end

     0   :  { %7 = vsyncpa [#allocation3], 0  ;;  %s1232_s0 = inlined_call_operand.vmem [shape: bf16[512,32], index: 0, kind: input, shape index: {}]   ;;  %s1233_s1 = inlined_call_operand.vmem [shape: bf16[32,104], index: 1, kind: input, shape index: {}]   ;;  %s1234_s2 = inlined_call_operand.hbm [shape: f32[4,512], index: 2, kind: output, shape index: {}]  }
   0x1   :  { %9 = vsyncpa [#allocation3 + $0x1], 0  ;;  %s1003_s9 = smov 0   ;;  %s1005_s10 = smov 0  }
   0x2   :  { %s1007_s11 = smov 0   ;;  %s1009_s12 = smov 0  }
   0x3 LB: > { %s1024_s13 = sadd.s32 4294967295, %s985_s12   ;;  %s765_s14 = sadd.s32 4294967294, %s985_s12   ;;  %s985_s12 = sphi %s1009_s12, %s1240_s12   ;;  %s981_s11 = sphi %s1007_s11, %s1239_s11   ;;  %s977_s10 = sphi %s1005_s10, %s1238_s10   ;;  %s973_s9 = sphi %s1003_s9, %s1237_s9  }
   0x4   : > { %s1028_s15 = sadd.s32 1, %s985_s12   ;;  %s69_s16 = sadd.s32 1, %s981_s11 }
   0x5   : > { %s66_s17 = ssub.s32 %s985_s12, %s1028_s15  ;;  %p79_p0 = scmp.ne.s32.totalorder %s981_s11, %s977_s10 }
   0x6   : > { %p67_p1 = scmp.eq.s32.totalorder %s66_s17, 0  ;;  %p80_p2 = scmp.eq.s32.totalorder %s1024_s13, 1 }
   0x7   : > { %p85_p3 = scmp.ne.s32.totalorder %s977_s10, %s973_s9  ;;  %p86_p4 = scmp.eq.s32.totalorder %s765_s14, 1 }
   0x8   : > { %s1039_s18 = scalar_select %p67_p1, %s981_s11, %s69_s16  }
   0x9   : > { %p1041_p5 = por %p80_p2, %p79_p0  ;;  %p1045_p6 = por %p86_p4, %p85_p3 }
   0xa   : > { %p768_p7 = scmp.ge.s32.totalorder %s985_s12, 1  ;;  %p116_p8 = scmp.lt.s32.totalorder %s985_s12, 3 }
   0xc   : > { %p117_p9 = pnand %p768_p7, %p116_p8 }
   0xd   : > { %v905_v0 = vld [vmem:[%s1233_s1] sm:$0xff] (!%p117_p9)   ;;  %s770_s23 = sshll.u32 (!%p117_p9), %s1024_s13, 5  ;;  %v906_v1 = vld [vmem:[%s1233_s1 + $0x8] sm:$0xff] (!%p117_p9)   ;;  %vm290_vm0 = vcmask (!%p117_p9), 261120   ;;  %vm589_vm1 = vcmask (!%p117_p9), 1041409   ;;  %vm591_vm2 = vcmask (!%p117_p9), 1042434  }
   0xe   : > { %120 = sbr.rel (%p117_p9) target bundleno = 436 (0x1b4), region = 28  ;;  %p139_p10 = scmp.lt.s32.totalorder (!%p117_p9), %s770_s23, 63  ;;  %194 = vxpose.xlu0.c.b16.start [1/2] (short) (narrow) (!%p117_p9), %v905_v0, 112  ;;  %vm593_vm3 = vcmask (!%p117_p9), 1043459   ;;  %vm595_vm4 = vcmask (!%p117_p9), 1044484   ;;  %vm597_vm5 = vcmask (!%p117_p9), 1045509  }
   0xf   : > { %vm599_vm6 = vcmask (!%p117_p9), 1046534   ;;  %vm601_vm7 = vcmask (!%p117_p9), 1047559   ;;  %s135_s30 = sand.u32 (!%p117_p9), 1, %s977_s10   ;;  %s802_s4 = sshll.u32 (!%p117_p9), %s1024_s13, 7 }
  0x10   : > { %s769_s3 = sshll.u32 (!%p117_p9), %s135_s30, 3  ;;  %s1187_s14 = scalar_lea.hbm (!%p117_p9), %s1234_s2, %s802_s4 }
  0x11   : > { %s137_s5 = scalar_lea.vmem (!%p117_p9), [#allocation2], %s769_s3  ;;  %s692_s13 = scalar_lea.sflag (!%p117_p9), [#allocation3], %s135_s30 }
  0x12   : > { %195 = vxpose.xlu0.c.b16.end [2/2] (short) (narrow) (!%p117_p9), %v906_v1, 112  ;;  %s706_s6 = sshll.u32 (!%p117_p9), %s137_s5, 4  ;;  %s987_s17 = smov (!%p117_p9), [#allocation2]   ;;  %s1189_s6 = int_to_ptr.vmem [resolvable:$true] %s706_s6 }
  0x13   : > { %s923_s16 = scalar_lea.vmem (!%p117_p9), %s1189_s6, 128  ;;  %s927_s21 = sshll.u32 (!%p117_p9), %s987_s17, 4  ;;  %s928_s21 = int_to_ptr.vmem [resolvable:$false] %s927_s21 }
  0x14   : > { %p924_p11 = scmp.ne.s32.totalorder (!%p117_p9), %s1189_s6, %s923_s16  ;;  %s929_s22 = scalar_lea.vmem (!%p117_p9), %s928_s21, 256 }
  0x15   : > { %s1242_s23 = smov (!%p139_p10, %s770_s23), 63  ;;  %p930_p0 = scmp.lt.s32.totalorder %s1189_s6, %s928_s21 }
  0x16   : > { %s771_s26 = sshll.u32 %s1242_s23, 2  ;;  %p925_p12 = pnand %p924_p11, %p1041_p5 }
  0x17   : > { %s1061_s29 = scalar_lea.vmem %s1232_s0, %s771_s26  ;;  %p931_p1 = scmp.lt.s32.totalorder %s929_s22, %s923_s16 }
  0x18   : > { %v907_v2 = vld [vmem:[%s1061_s29 + $0x40] sm:$0xff]   ;;  %v909_v4 = vld [vmem:[%s1061_s29 + $0x48] sm:$0xff]   ;;  %v911_v8 = vld [vmem:[%s1061_s29 + $0x50] sm:$0xff]   ;;  %p926_p13 = pneg %p925_p12 }
  0x19   : > { %v908_v3 = vld [vmem:[%s1061_s29] sm:$0xff]   ;;  %849 = vmatprep.subr.msk.bf16.mxu0 %vm290_vm0, %v907_v2  ;;  %850 = vmatprep.subr.msk.bf16.mxu1 %vm290_vm0, %v907_v2  ;;  %v910_v6 = vld [vmem:[%s1061_s29 + $0x8] sm:$0xff]   ;;  %v912_v9 = vld [vmem:[%s1061_s29 + $0x10] sm:$0xff]   ;;  %p932_p2 = por %p931_p1, %p930_p0 }
  0x1a   : > { %v313_v5 = vsel %vm290_vm0, %v908_v3, 0  ;;  %v316_v7 = vsel %vm290_vm0, %v910_v6, 0  ;;  %v319_v10 = vsel %vm290_vm0, %v912_v9, 0  ;;  %v913_v11 = vld [vmem:[%s1061_s29 + $0x58] sm:$0xff]   ;;  %v915_v14 = vld [vmem:[%s1061_s29 + $0x60] sm:$0xff]   ;;  %v917_v17 = vld [vmem:[%s1061_s29 + $0x68] sm:$0xff]  }
  0x1b   : > { %804 = vmatpush3.bf16.xpose.msra.mxu0 %v313_v5  ;;  %841 = vmatpush3.bf16.xpose.msra.mxu1 %v313_v5  ;;  %v914_v12 = vld [vmem:[%s1061_s29 + $0x18] sm:$0xff]   ;;  %v916_v15 = vld [vmem:[%s1061_s29 + $0x20] sm:$0xff]   ;;  %v918_v18 = vld [vmem:[%s1061_s29 + $0x28] sm:$0xff]   ;;  %p933_p3 = pnand %p932_p2, %p926_p13 }
  0x1c   : > { %851 = vmatprep.subr.msk.bf16.mxu0 %vm290_vm0, %v909_v4  ;;  %852 = vmatprep.subr.msk.bf16.mxu1 %vm290_vm0, %v909_v4  ;;  %v322_v13 = vsel %vm290_vm0, %v914_v12, 0  ;;  %v325_v16 = vsel %vm290_vm0, %v916_v15, 0  ;;  %v328_v19 = vsel %vm290_vm0, %v918_v18, 0  ;;  %v919_v20 = vld [vmem:[%s1061_s29 + $0x70] sm:$0xff]   ;;  %v921_v23 = vld [vmem:[%s1061_s29 + $0x78] sm:$0xff]  }
  0x1d   : > { %v920_v21 = vld [vmem:[%s1061_s29 + $0x30] sm:$0xff]   ;;  %v922_v24 = vld [vmem:[%s1061_s29 + $0x38] sm:$0xff]  }
  0x1e   : > { %v331_v22 = vsel %vm290_vm0, %v920_v21, 0  ;;  %v334_v25 = vsel %vm290_vm0, %v922_v24, 0 }
  0x23   : > { %806 = vmatpush3.bf16.xpose.msra.mxu0 %v316_v7  ;;  %842 = vmatpush3.bf16.xpose.msra.mxu1 %v316_v7 }
  0x24   : > { %853 = vmatprep.subr.msk.bf16.mxu0 %vm290_vm0, %v911_v8  ;;  %854 = vmatprep.subr.msk.bf16.mxu1 %vm290_vm0, %v911_v8 }
  0x2b   : > { %808 = vmatpush3.bf16.xpose.msra.mxu0 %v319_v10  ;;  %843 = vmatpush3.bf16.xpose.msra.mxu1 %v319_v10 }
  0x2c   : > { %855 = vmatprep.subr.msk.bf16.mxu0 %vm290_vm0, %v913_v11  ;;  %856 = vmatprep.subr.msk.bf16.mxu1 %vm290_vm0, %v913_v11 }
  0x33   : > { %810 = vmatpush3.bf16.xpose.msra.mxu0 %v322_v13  ;;  %844 = vmatpush3.bf16.xpose.msra.mxu1 %v322_v13 }
  0x34   : > { %857 = vmatprep.subr.msk.bf16.mxu0 %vm290_vm0, %v915_v14  ;;  %858 = vmatprep.subr.msk.bf16.mxu1 %vm290_vm0, %v915_v14 }
  0x3b   : > { %812 = vmatpush3.bf16.xpose.msra.mxu0 %v325_v16  ;;  %845 = vmatpush3.bf16.xpose.msra.mxu1 %v325_v16 }
  0x3c   : > { %859 = vmatprep.subr.msk.bf16.mxu0 %vm290_vm0, %v917_v17  ;;  %860 = vmatprep.subr.msk.bf16.mxu1 %vm290_vm0, %v917_v17 }
  0x43   : > { %814 = vmatpush3.bf16.xpose.msra.mxu0 %v328_v19  ;;  %846 = vmatpush3.bf16.xpose.msra.mxu1 %v328_v19 }
  0x44   : > { %861 = vmatprep.subr.msk.bf16.mxu0 %vm290_vm0, %v919_v20  ;;  %862 = vmatprep.subr.msk.bf16.mxu1 %vm290_vm0, %v919_v20 }
  0x4b   : > { %816 = vmatpush3.bf16.xpose.msra.mxu0 %v331_v22  ;;  %847 = vmatpush3.bf16.xpose.msra.mxu1 %v331_v22 }
  0x4c   : > { %863 = vmatprep.subr.msk.bf16.mxu0 %vm290_vm0, %v921_v23  ;;  %864 = vmatprep.subr.msk.bf16.mxu1 %vm290_vm0, %v921_v23 }
  0x53   : > { %818 = vmatpush3.bf16.xpose.msra.mxu0 %v334_v25  ;;  %848 = vmatpush3.bf16.xpose.msra.mxu1 %v334_v25 }
  0x74   : > { %v202_v26 = vpop.trf.xlu0 }
  0x75   : > { %819 = vmatprep.mubr.msk.bf16.mxu0 %vm290_vm0, %v202_v26 }
  0x76   : > { %820 = vmatmul.mubr.msk.bf16.vlgmr.msra.gmra.mrb[0].mxu0 %vm290_vm0, %v202_v26 }
  0x78   : > { %v203_v27 = vpop.trf.xlu0 }
  0x79   : > { %821 = vmatprep.mubr.msk.bf16.mxu0 %vm290_vm0, %v203_v27 }
  0x7c   : > { %v204_v28 = vpop.trf.xlu0 }
  0x7e   : > { %822 = vmatmul.mubr.msk.bf16.gmra.mrb[4].mxu0 %vm290_vm0, %v203_v27 }
  0x7f   : > { %823 = vmatprep.mubr.msk.bf16.mxu0 %vm290_vm0, %v204_v28 }
  0x80   : > { %v205_v29 = vpop.trf.xlu0 }
  0x84   : > { %v206_v30 = vpop.trf.xlu0 }
  0x85   : > { %827 = vmatprep.mubr.msk.bf16.mxu1 %vm290_vm0, %v206_v30 }
  0x86   : > { %824 = vmatmul.mubr.msk.bf16.gmra.mrb[8].mxu0 %vm290_vm0, %v204_v28  ;;  %828 = vmatmul.mubr.msk.bf16.vlgmr.msra.gmra.mrb[0].mxu1 %vm290_vm0, %v206_v30 }
  0x87   : > { %825 = vmatprep.mubr.msk.bf16.mxu0 %vm290_vm0, %v205_v29 }
  0x88   : > { %v207_v31 = vpop.trf.xlu0 }
  0x89   : > { %829 = vmatprep.mubr.msk.bf16.mxu1 %vm290_vm0, %v207_v31 }
  0x8c   : > { %v208_v32 = vpop.trf.xlu0 }
  0x8e   : > { %826 = vmatmul.mubr.msk.bf16.gmra.mrb[12].mxu0 %vm290_vm0, %v205_v29  ;;  %830 = vmatmul.mubr.msk.bf16.gmra.mrb[4].mxu1 %vm290_vm0, %v207_v31 }
  0x8f   : > { %831 = vmatprep.mubr.msk.bf16.mxu1 %vm290_vm0, %v208_v32 }
  0x96   : > { %832 = vmatmul.mubr.msk.bf16.gmra.mrb[8].mxu1 %vm290_vm0, %v208_v32 }
 0x149   : > { %v1117_v33 = vpop.f32.mrb[0].mxu0 }
 0x14a   : > { %v1119_v34 = vpop.f32.mrb[1].mxu0 }
 0x14b   : > { %v1121_v35 = vpop.f32.mrb[2].mxu0 }
 0x14c   : > { %v1123_v36 = vpop.f32.mrb[3].mxu0 }
 0x151   : > { %v1125_v37 = vpop.f32.mrb[4].mxu0 }
 0x152   : > { %v1127_v38 = vpop.f32.mrb[5].mxu0 }
 0x153   : > { %v1129_v39 = vpop.f32.mrb[6].mxu0 }
 0x154   : > { %v1131_v40 = vpop.f32.mrb[7].mxu0 }
 0x159   : > { %v414_v41 = vpop.f32.mrb[8].mxu0  ;;  %v434_v42 = vpop.f32.mrb[0].mxu1 }
 0x15a   : > { %v416_v43 = vpop.f32.mrb[9].mxu0  ;;  %v436_v44 = vpop.f32.mrb[1].mxu1 }
 0x15b   : > { %v418_v45 = vpop.f32.mrb[10].mxu0  ;;  %v438_v46 = vpop.f32.mrb[2].mxu1 }
 0x15c   : > { %v420_v47 = vpop.f32.mrb[11].mxu0  ;;  %v440_v48 = vpop.f32.mrb[3].mxu1 }
 0x161   : > { %v424_v49 = vpop.f32.mrb[12].mxu0  ;;  %v444_v50 = vpop.f32.mrb[4].mxu1 }
 0x162   : > { %v426_v51 = vpop.f32.mrb[13].mxu0  ;;  %v446_v52 = vpop.f32.mrb[5].mxu1 }
 0x163   : > { %v428_v53 = vpop.f32.mrb[14].mxu0  ;;  %v448_v54 = vpop.f32.mrb[6].mxu1 }
 0x164   : > { %v430_v55 = vpop.f32.mrb[15].mxu0  ;;  %v450_v56 = vpop.f32.mrb[7].mxu1 }
 0x169   : > { %v454_v57 = vpop.f32.mrb[8].mxu1 }
 0x16a   : > { %v461_v58 = vmul.f32 %v454_v57, %v414_v41  ;;  %v463_v59 = vmul.f32 %v454_v57, %v418_v45  ;;  %v465_v60 = vmul.f32 %v454_v57, %v424_v49  ;;  %v467_v61 = vmul.f32 %v454_v57, %v428_v53  ;;  %v456_v62 = vpop.f32.mrb[9].mxu1 }
 0x16b   : > { %v469_v63 = vmul.f32 %v454_v57, %v434_v42  ;;  %v471_v0 = vmul.f32 %v454_v57, %v438_v46  ;;  %v1133_v1 = vmul.f32 %v454_v57, %v444_v50  ;;  %v462_v2 = vmul.f32 %v456_v62, %v416_v43  ;;  %v458_v3 = vpop.f32.mrb[10].mxu1 }
 0x16c   : > { %v477_v4 = vrot.slane %v461_v58, 4  ;;  %v489_v5 = vrot.slane %v463_v59, 4  ;;  %v501_v6 = vrot.slane %v465_v60, 4  ;;  %v464_v7 = vmul.f32 %v456_v62, %v420_v47  ;;  %v459_v8 = vpop.f32.mrb[11].mxu1 }
 0x16d   : > { %v525_v9 = vrot.slane %v469_v63, 4  ;;  %v537_v10 = vrot.slane %v471_v0, 4  ;;  %v466_v11 = vmul.f32 %v456_v62, %v426_v51  ;;  %v468_v12 = vmul.f32 %v456_v62, %v430_v55 }
 0x16e   : > { %v478_v13 = vadd.f32 %v477_v4, %v461_v58  ;;  %v490_v14 = vadd.f32 %v489_v5, %v463_v59  ;;  %v502_v15 = vadd.f32 %v501_v6, %v465_v60  ;;  %v470_v16 = vmul.f32 %v456_v62, %v436_v44 }
 0x16f   : > { %v526_v17 = vadd.f32 %v525_v9, %v469_v63  ;;  %v1135_v18 = vadd.f32 %v537_v10, %v471_v0  ;;  %v472_v19 = vmul.f32 %v456_v62, %v440_v48  ;;  %v1137_v20 = vmul.f32 %v456_v62, %v446_v52 }
 0x170   : > { %v479_v21 = vrot.slane %v478_v13, 2  ;;  %v491_v22 = vrot.slane %v490_v14, 2  ;;  %v483_v23 = vrot.slane %v462_v2, 4  ;;  %v495_v24 = vrot.slane %v464_v7, 4 }
 0x171   : > { %v507_v25 = vrot.slane %v466_v11, 4  ;;  %v531_v26 = vrot.slane %v470_v16, 4  ;;  %v543_v27 = vrot.slane %v472_v19, 4  ;;  %v1139_v28 = vmul.f32 %v454_v57, %v448_v54 }
 0x172   : > { %v484_v29 = vadd.f32 %v483_v23, %v462_v2  ;;  %v496_v30 = vadd.f32 %v495_v24, %v464_v7  ;;  %v1141_v31 = vmul.f32 %v456_v62, %v450_v56  ;;  %v480_v32 = vadd.f32 %v479_v21, %v478_v13 }
 0x173   : > { %v508_v41 = vadd.f32 %v507_v25, %v466_v11  ;;  %v532_v42 = vadd.f32 %v531_v26, %v470_v16  ;;  %v544_v43 = vadd.f32 %v543_v27, %v472_v19  ;;  %v492_v44 = vadd.f32 %v491_v22, %v490_v14 }
 0x174   : > { %v485_v45 = vrot.slane %v484_v29, 2  ;;  %v497_v46 = vrot.slane %v496_v30, 2  ;;  %v481_v47 = vrot.slane %v480_v32, 1  ;;  %v503_v48 = vrot.slane %v502_v15, 2 }
 0x175   : > { %v493_v49 = vrot.slane %v492_v44, 1  ;;  %v509_v50 = vrot.slane %v508_v41, 2  ;;  %v513_v51 = vrot.slane %v467_v61, 4  ;;  %v519_v52 = vrot.slane %v468_v12, 4 }
 0x176   : > { %v482_v53 = vadd.f32 %v481_v47, %v480_v32  ;;  %v486_v54 = vadd.f32 %v485_v45, %v484_v29  ;;  %v498_v55 = vadd.f32 %v497_v46, %v496_v30  ;;  %v504_v57 = vadd.f32 %v503_v48, %v502_v15 }
 0x177   : > { %v494_v56 = vadd.f32 %v493_v49, %v492_v44  ;;  %v510_v58 = vadd.f32 %v509_v50, %v508_v41  ;;  %v514_v59 = vadd.f32 %v513_v51, %v467_v61  ;;  %v520_v60 = vadd.f32 %v519_v52, %v468_v12 }
 0x178   : > { %v487_v62 = vrot.slane %v486_v54, 1  ;;  %v499_v63 = vrot.slane %v498_v55, 1  ;;  %v505_v0 = vrot.slane %v504_v57, 1  ;;  %v527_v2 = vrot.slane %v526_v17, 2 }
 0x179   : > { %v511_v3 = vrot.slane %v510_v58, 1  ;;  %v515_v4 = vrot.slane %v514_v59, 2  ;;  %v521_v5 = vrot.slane %v520_v60, 2  ;;  %v533_v6 = vrot.slane %v532_v42, 2 }
 0x17a   : > { %v488_v7 = vadd.f32 %v487_v62, %v486_v54  ;;  %v500_v8 = vadd.f32 %v499_v63, %v498_v55  ;;  %v506_v9 = vadd.f32 %v505_v0, %v504_v57  ;;  %v528_v10 = vadd.f32 %v527_v2, %v526_v17 }
 0x17b   : > { %v512_v11 = vadd.f32 %v511_v3, %v510_v58  ;;  %v516_v13 = vadd.f32 %v515_v4, %v514_v59  ;;  %v522_v14 = vadd.f32 %v521_v5, %v520_v60  ;;  %v534_v61 = vadd.f32 %v533_v6, %v532_v42 }
 0x17c   : > { %v529_v12 = vrot.slane %v528_v10, 1  ;;  %v539_v15 = vrot.slane %v1135_v18, 2  ;;  %v545_v16 = vrot.slane %v544_v43, 2  ;;  %v549_v19 = vrot.slane %v1133_v1, 4 }
 0x17d   : > { %v517_v21 = vrot.slane %v516_v13, 1  ;;  %v523_v22 = vrot.slane %v522_v14, 1  ;;  %v535_v23 = vrot.slane %v534_v61, 1  ;;  %v555_v24 = vrot.slane %v1137_v20, 4 }
 0x17e   : > { %v530_v25 = vadd.f32 %v529_v12, %v528_v10  ;;  %v540_v17 = vadd.f32 %v539_v15, %v1135_v18  ;;  %v546_v26 = vadd.f32 %v545_v16, %v544_v43  ;;  %v550_v27 = vadd.f32 %v549_v19, %v1133_v1 }
 0x17f   : > { %v518_v29 = vadd.f32 %v517_v21, %v516_v13  ;;  %v524_v30 = vadd.f32 %v523_v22, %v522_v14  ;;  %v536_v32 = vadd.f32 %v535_v23, %v534_v61  ;;  %v556_v41 = vadd.f32 %v555_v24, %v1137_v20 }
 0x180   : > { %v541_v42 = vrot.slane %v540_v17, 1  ;;  %v547_v44 = vrot.slane %v546_v26, 1  ;;  %v551_v45 = vrot.slane %v550_v27, 2  ;;  %v561_v46 = vrot.slane %v1139_v28, 4 }
 0x181   : > { %v557_v47 = vrot.slane %v556_v41, 2  ;;  %v567_v48 = vrot.slane %v1141_v31, 4  ;;  %v590_v49 = vsel %vm589_vm1, %v494_v56, %v482_v53  ;;  %v603_v18 = vsel %vm589_vm1, %v500_v8, %v488_v7 }
 0x182   : > { %v542_v43 = vadd.f32 %v541_v42, %v540_v17  ;;  %v548_v50 = vadd.f32 %v547_v44, %v546_v26  ;;  %v552_v1 = vadd.f32 %v551_v45, %v550_v27  ;;  %v562_v51 = vadd.f32 %v561_v46, %v1139_v28 }
 0x183   : > { %v558_v52 = vadd.f32 %v557_v47, %v556_v41  ;;  %v568_v20 = vadd.f32 %v567_v48, %v1141_v31  ;;  %v592_v54 = vsel %vm591_vm2, %v506_v9, %v590_v49  ;;  %v604_v55 = vsel %vm591_vm2, %v512_v11, %v603_v18 }
 0x184   : > { %v553_v57 = vrot.slane %v552_v1, 1  ;;  %v563_v58 = vrot.slane %v562_v51, 2  ;;  %v594_v59 = vsel %vm593_vm3, %v518_v29, %v592_v54  ;;  %v605_v53 = vsel %vm593_vm3, %v524_v30, %v604_v55 }
 0x185   : > { %v559_v56 = vrot.slane %v558_v52, 1  ;;  %v569_v60 = vrot.slane %v568_v20, 2  ;;  %v596_v62 = vsel %vm595_vm4, %v530_v25, %v594_v59  ;;  %v606_v63 = vsel %vm595_vm4, %v536_v32, %v605_v53 }
 0x186   : > { %v554_v28 = vadd.f32 %v553_v57, %v552_v1  ;;  %v564_v0 = vadd.f32 %v563_v58, %v562_v51  ;;  %v598_v31 = vsel %vm597_vm5, %v542_v43, %v596_v62  ;;  %v607_v2 = vsel %vm597_vm5, %v548_v50, %v606_v63 }
 0x187   : > { %v560_v3 = vadd.f32 %v559_v56, %v558_v52  ;;  %v570_v4 = vadd.f32 %v569_v60, %v568_v20 }
 0x188   : > { %v565_v5 = vrot.slane %v564_v0, 1  ;;  %v600_v6 = vsel %vm599_vm6, %v554_v28, %v598_v31 }
 0x189   : > { %v571_v7 = vrot.slane %v570_v4, 1  ;;  %v608_v8 = vsel %vm599_vm6, %v560_v3, %v607_v2 }
 0x18a   : > { %v566_v9 = vadd.f32 %v565_v5, %v564_v0 }
 0x18b   : > { %v572_v10 = vadd.f32 %v571_v7, %v570_v4 }
 0x18c   : > { %v602_v11 = vsel %vm601_vm7, %v566_v9, %v600_v6 }
 0x18d   : > { %v609_v13 = vsel %vm601_vm7, %v572_v10, %v608_v8  ;;  %v612_v14 = vmul.f32 %v602_v11, %v1117_v33  ;;  %v614_v61 = vmul.f32 %v602_v11, %v1121_v35  ;;  %v616_v12 = vmul.f32 %v602_v11, %v1125_v37 }
 0x18e   : > { %v613_v15 = vmul.f32 %v609_v13, %v1119_v34  ;;  %v615_v16 = vmul.f32 %v609_v13, %v1123_v36  ;;  %v617_v19 = vmul.f32 %v609_v13, %v1127_v38  ;;  %v618_v21 = vmul.f32 %v602_v11, %v1129_v39 }
 0x18f   : > { %v619_v22 = vmul.f32 %v609_v13, %v1131_v40  ;;  %v620_v23 = vrot.slane %v612_v14, 4  ;;  %v632_v24 = vrot.slane %v614_v61, 4  ;;  %v644_v25 = vrot.slane %v616_v12, 4 }
 0x190   : > { %v626_v17 = vrot.slane %v613_v15, 4  ;;  %v638_v26 = vrot.slane %v615_v16, 4  ;;  %v650_v33 = vrot.slane %v617_v19, 4  ;;  %v656_v27 = vrot.slane %v618_v21, 4 }
 0x191   : > { %v621_v35 = vadd.f32 %v620_v23, %v612_v14  ;;  %v633_v29 = vadd.f32 %v632_v24, %v614_v61  ;;  %v645_v37 = vadd.f32 %v644_v25, %v616_v12  ;;  %v662_v30 = vrot.slane %v619_v22, 4 }
 0x192   : > { %v627_v34 = vadd.f32 %v626_v17, %v613_v15  ;;  %v639_v32 = vadd.f32 %v638_v26, %v615_v16  ;;  %v651_v36 = vadd.f32 %v650_v33, %v617_v19  ;;  %v657_v41 = vadd.f32 %v656_v27, %v618_v21 }
 0x193   : > { %v622_v38 = vrot.slane %v621_v35, 2  ;;  %v634_v42 = vrot.slane %v633_v29, 2  ;;  %v646_v39 = vrot.slane %v645_v37, 2  ;;  %v663_v44 = vadd.f32 %v662_v30, %v619_v22 }
 0x194   : > { %v628_v40 = vrot.slane %v627_v34, 2  ;;  %v640_v45 = vrot.slane %v639_v32, 2  ;;  %v652_v46 = vrot.slane %v651_v36, 2  ;;  %v658_v47 = vrot.slane %v657_v41, 2 }
 0x195   : > { %v623_v48 = vadd.f32 %v622_v38, %v621_v35  ;;  %v635_v49 = vadd.f32 %v634_v42, %v633_v29  ;;  %v647_v18 = vadd.f32 %v646_v39, %v645_v37  ;;  %v664_v43 = vrot.slane %v663_v44, 2 }
 0x196   : > { %v629_v50 = vadd.f32 %v628_v40, %v627_v34  ;;  %v641_v1 = vadd.f32 %v640_v45, %v639_v32  ;;  %v653_v51 = vadd.f32 %v652_v46, %v651_v36  ;;  %v659_v52 = vadd.f32 %v658_v47, %v657_v41 }
 0x197   : > { %v624_v20 = vrot.slane %v623_v48, 1  ;;  %v636_v54 = vrot.slane %v635_v49, 1  ;;  %v648_v55 = vrot.slane %v647_v18, 1  ;;  %v665_v57 = vadd.f32 %v664_v43, %v663_v44 }
 0x198   : > { %v630_v58 = vrot.slane %v629_v50, 1  ;;  %v642_v59 = vrot.slane %v641_v1, 1  ;;  %v654_v53 = vrot.slane %v653_v51, 1  ;;  %v660_v56 = vrot.slane %v659_v52, 1 }
 0x199   : > { %v625_v60 = vadd.f32 %v624_v20, %v623_v48  ;;  %v637_v62 = vadd.f32 %v636_v54, %v635_v49  ;;  %v649_v63 = vadd.f32 %v648_v55, %v647_v18  ;;  %v666_v28 = vrot.slane %v665_v57, 1 }
 0x19a   : > { %v631_v0 = vadd.f32 %v630_v58, %v629_v50  ;;  %v643_v31 = vadd.f32 %v642_v59, %v641_v1  ;;  %v655_v2 = vadd.f32 %v654_v53, %v653_v51  ;;  %v661_v3 = vadd.f32 %v660_v56, %v659_v52 }
 0x19b   : > { %v667_v4 = vadd.f32 %v666_v28, %v665_v57 }
 0x19c   : > { %v676_v5 = vcombine.low %v625_v60, %v631_v0  ;;  %v677_v6 = vcombine.low %v637_v62, %v643_v31  ;;  %v678_v7 = vcombine.low %v649_v63, %v655_v2 }
 0x19d   : > { %v679_v8 = vcombine.low %v661_v3, %v667_v4 }
 0x19e   : > { %v680_v9 = vrot.slane %v677_v6, 7  ;;  %v683_v11 = vrot.slane %v678_v7, 6 }
 0x19f   : > { %v686_v61 = vrot.slane %v679_v8, 5 }
 0x1a0   : > { %v681_v10 = vsel %vm589_vm1, %v680_v9, %v676_v5 }
 0x1a1   : > { %v682_v13 = vsel %vm597_vm5, %v680_v9, %v681_v10 }
 0x1a2   : > { %v684_v14 = vsel %vm591_vm2, %v683_v11, %v682_v13 }
 0x1a3   : > { %v685_v12 = vsel %vm599_vm6, %v683_v11, %v684_v14 }
 0x1a4   : > { %v687_v15 = vsel %vm593_vm3, %v686_v61, %v685_v12 }
 0x1a5   : > { %v688_v16 = vsel %vm601_vm7, %v686_v61, %v687_v15 }
 0x1a6   : > { %690 = vst [vmem:[%s137_s5] sm:$0xff] %v688_v16 }
 0x1a7   : > { %936 = shalt.err (!%p933_p3)
}
 0x1a8   : > { %s937_s23 = scalar_lea.hbm %s1187_s14, 128  ;;  %s941_s26 = scalar_lea.hbm %s1234_s2, 256 }
 0x1a9   : > { %p938_p4 = scmp.ne.s32.totalorder %s1187_s14, %s937_s23  ;;  %p942_p9 = scmp.lt.u32.totalorder %s1187_s14, %s1234_s2 }
 0x1aa   : > { %p943_p10 = scmp.lt.u32.totalorder %s941_s26, %s937_s23  ;;  %p945_p12 = scmp.lt.u32.totalorder %s937_s23, %s1187_s14 }
 0x1ab   : > { %p939_p7 = pnand %p938_p4, %p1041_p5 }
 0x1ac   : > { %p944_p11 = por %p943_p10, %p942_p9 }
 0x1ad   : > { %p940_p8 = pneg %p939_p7 }
 0x1ae   : > { %p946_p13 = por %p945_p12, %p944_p11 }
 0x1b0   : > { %p947_p0 = pnand %p946_p13, %p940_p8 }
 0x1b2   : > { %950 = shalt.err (!%p947_p0)
}
 0x1b3   : > { %865 = dma.vmem_to_hbm [thread:$0]  (%p1041_p5), %s1189_s6, 128, %s1187_s14, %s692_s13  }
 0x1b4 PF: > { %p871_p1 = scmp.ge.s32.totalorder %s985_s12, 2  ;;  %s718_s29 = sand.u32 1, %s973_s9  }
 0x1b5   : > { %s719_s30 = scalar_lea.sflag [#allocation3], %s718_s29 }
 0x1b6   : > { %p868_p2 = pnand %p871_p1, %p1045_p6 }
 0x1b8   : > { %968 = dma.done.wait (!%p868_p2), %s719_s30, 128  }
 0x1b9   : > { %970 = vsyncadd (!%p868_p2), %s719_s30, 4294967168  ;;  %p12_p3 = scmp.ge.s32.totalorder %s1028_s15, 4   ;;  %s1237_s9 = smov %s977_s10 }
 0x1ba   : > { %s1238_s10 = smov %s981_s11  ;;  %s1239_s11 = smov %s1039_s18 }
 0x1bb   : > { %s1240_s12 = smov %s1028_s15  ;;  %14 = sbr.rel (!%p12_p3) target bundleno = 3 (0x3), region = 63 }
 0x1c2   :  { %724 = vsyncpa [#allocation3], 1 }
 0x1c3   :  { %726 = vsyncpa [#allocation3 + $0x1], 1 }

</bundles_post_ra>
